<compile_context>
chip_gen: v6e
topology: v6e:2x2x1
jax: 0.10.0
libtpu: 0.0.40
codegen_flags: <defaults>
</compile_context>

<pallas_src>
import jax
import jax.numpy as jnp
from jax.experimental import pallas as pl
from jax.experimental.pallas import tpu as pltpu


# ----------------------------------------------------------------------------- kernel
def _bf16_matmul_kernel(a_ref, b_ref, o_ref):
    # a_ref: (tn, K)    row tile of the left operand (cast to bf16 in-register)
    # b_ref: (K, Nout)  resident bf16 weight
    # o_ref: (tn, Nout) lane-dense output slab
    a_bf = a_ref[...].astype(jnp.bfloat16)
    o_ref[...] = jnp.dot(
        a_bf, b_ref[...], preferred_element_type=jnp.float32
    ).astype(o_ref.dtype)


# ----------------------------------------------------------------------------- tiling
def _vmem_plan():
    """Return (block budget bytes, vmem_limit_bytes), sized per TPU generation."""
    phys = 128 * 1024 * 1024
    try:
        phys = int(pltpu.get_tpu_info().vmem_capacity_bytes)
    except Exception:
        pass
    if phys >= 96 * 1024 * 1024:                 # v5e / v6e: 128 MiB physical VMEM
        return 48 * 1024 * 1024, 64 * 1024 * 1024
    return 20 * 1024 * 1024, 32 * 1024 * 1024    # v7x: 64 MiB physical / 32 MiB scoped


def _resident_spec(k, nout):
    """Constant-index weight block; single-buffered where pipeline_mode is supported."""
    idx = lambda i: (0, 0)
    try:
        return pl.BlockSpec((k, nout), idx, pipeline_mode=pl.Buffered(1))
    except Exception:
        return pl.BlockSpec((k, nout), idx)


def _pick_tile_rows(rows, k, nout, a_itemsize, out_itemsize, budget_bytes, w_bytes):
    """Largest sublane-aligned row tile fitting the VMEM budget, capped so that the
    grid has >= 2 programs when rows allow it (v7x has 2 TensorCores)."""
    per_row = 2 * (k * a_itemsize + nout * out_itemsize)   # double-buffered in + out
    avail = max(budget_bytes - 2 * w_bytes, 8 * per_row)   # weight counted double (conservative)
    cap = max(8, (avail // per_row) // 8 * 8)
    half = (((rows + 1) // 2) + 7) // 8 * 8                # ~rows/2, sublane aligned
    tn = min(cap, half)
    # tn == rows is always a legal block dim; tn < rows is a multiple of 8.
    return min(tn, rows)


def _tiled_rows_matmul(a, b_bf16, out_dtype, budget_bytes, vmem_limit_bytes):
    """out[r, :] = a[r, :] @ b  with b bf16-resident, tiled over rows only."""
    rows, k = a.shape
    kb, nout = b_bf16.shape
    assert k == kb
    out_dtype = jnp.dtype(out_dtype)

    w_bytes = 2 * k * nout                                  # bf16 weight footprint
    tn = _pick_tile_rows(rows, k, nout, a.dtype.itemsize, out_dtype.itemsize,
                         budget_bytes, w_bytes)
    grid = (pl.cdiv(rows, tn),)                             # partial trailing block is masked

    cost = pl.CostEstimate(
        flops=2 * rows * k * nout,
        transcendentals=0,
        bytes_accessed=(a.dtype.itemsize * rows * k
                        + out_dtype.itemsize * rows * nout
                        + w_bytes),
    )

    return pl.pallas_call(
        _bf16_matmul_kernel,
        out_shape=jax.ShapeDtypeStruct((rows, nout), out_dtype),
        grid_spec=pltpu.PrefetchScalarGridSpec(
            num_scalar_prefetch=0,
            grid=grid,
            in_specs=[
                pl.BlockSpec((tn, k), lambda i: (i, 0)),    # row tile of a
                _resident_spec(k, nout),                    # resident bf16 weight
            ],
            out_specs=pl.BlockSpec((tn, nout), lambda i: (i, 0)),
        ),
        compiler_params=pltpu.CompilerParams(
            dimension_semantics=("parallel",),              # independent row tiles -> megacore
            vmem_limit_bytes=vmem_limit_bytes,
        ),
        cost_estimate=cost,
    )(a, b_bf16)


# ----------------------------------------------------------------------------- module
def _ema_matrix(s, alpha):
    """Lower-triangular (S, S) matrix: ema[k, j] = (1-alpha) * alpha^(k-j) for j <= k."""
    k_idx = jnp.arange(s)[:, None]
    j_idx = jnp.arange(s)[None, :]
    expo = jnp.maximum(k_idx - j_idx, 0).astype(jnp.float32)
    return jnp.where(j_idx <= k_idx, (1.0 - alpha) * (alpha ** expo), 0.0)


def aggregate_forward(x, weight, alpha=0.5, force_two_stage=None):
    """x: (N, S, F); weight: (O, F) as in nn.Linear(bias=False). Returns (hk, hiddens)."""
    alpha = float(alpha)
    n, s, f = x.shape
    o = weight.shape[0]
    out_dtype = x.dtype

    budget, vmem_limit = _vmem_plan()
    ema = _ema_matrix(s, alpha)                      # (S, S)
    w_t = weight.T.astype(jnp.float32)               # (F, O)

    fused_w_bytes = 2 * (s * f) * (s * o)            # bf16 fused weight footprint
    if force_two_stage is None:
        # Fused form inflates FLOPs ~S^2 and its weight grows as S^2*F*O: switch to the
        # two-stage form once S (or the fused weight) gets large.
        two_stage = (s >= 16) or (fused_w_bytes > 4 * 1024 * 1024)
    else:
        two_stage = bool(force_two_stage)

    if not two_stage:
        # One lane-dense MXU matmul per N-tile:
        #   hiddens_slab[n, k*O+o'] = (x.reshape(N, S*F) @ M)[n, k*O+o'],
        #   M[(j*F+f'), (k*O+o')] = ema[k, j] * W.T[f', o'].
        fused = jnp.einsum("kj,fo->jfko", ema, w_t).reshape(s * f, s * o)
        fused = fused.astype(jnp.bfloat16)
        hid2 = _tiled_rows_matmul(x.reshape(n, s * f), fused, out_dtype,
                                  budget, vmem_limit)
    else:
        # Stage 1: per-segment projection (N*S, F) @ (F, O), f32 intermediate.
        proj = _tiled_rows_matmul(x.reshape(n * s, f), w_t.astype(jnp.bfloat16),
                                  jnp.float32, budget, vmem_limit)
        # Stage 2: lane-dense EMA mix (N, S*O) @ (S*O, S*O) with M2 = ema^T (x) I_O.
        mix = jnp.einsum("kj,ab->jakb", ema, jnp.eye(o, dtype=jnp.float32))
        mix = mix.reshape(s * o, s * o).astype(jnp.bfloat16)
        hid2 = _tiled_rows_matmul(proj.reshape(n, s * o), mix, out_dtype,
                                  budget, vmem_limit)

    hiddens = hid2.reshape(n, s, o)   # free contiguous reshape of the lane-dense slab
    hk = hiddens[:, -1, :]            # h_{S-1}: host-side slice, no lane-sparse kernel output
    return hk, hiddens


def aggregate_reference(x, weight, alpha=0.5):
    """Plain-JAX reference mirroring the PyTorch loop."""
    n, s, f = x.shape
    o = weight.shape[0]
    hk = jnp.zeros((n, o), dtype=x.dtype)
    hiddens = []
    for k in range(s):
        xk = x[:, k, :]
        hk = alpha * hk + (1.0 - alpha) * (xk @ weight.T)
        hiddens.append(hk)
    return hk, jnp.stack(hiddens, axis=1)


if __name__ == "__main__":
    # Small, deterministic example shapes consistent with the module.
    num_samples, num_segments = 2, 8
    in_features, out_features = 32, 16
    alpha = 0.5

    key = jax.random.PRNGKey(0)
    kx, kw = jax.random.split(key)
    x = jax.random.normal(kx, (num_samples, num_segments, in_features), dtype=jnp.float32)
    # Deterministic nn.Linear-like init (bias=False): shape (out_features, in_features).
    bound = 1.0 / (in_features ** 0.5)
    weight = jax.random.uniform(
        kw, (out_features, in_features), minval=-bound, maxval=bound, dtype=jnp.float32
    )

    # Default (fused) path.
    hk, hiddens = aggregate_forward(x, weight, alpha)
    jax.block_until_ready((hk, hiddens))

    # Also exercise the large-S two-stage path (same semantics, different tiling).
    hk2, hiddens2 = aggregate_forward(x, weight, alpha, force_two_stage=True)
    jax.block_until_ready((hk2, hiddens2))

    hk_ref, hiddens_ref = aggregate_reference(x, weight, alpha)

    assert hk.shape == (num_samples, out_features)
    assert hiddens.shape == (num_samples, num_segments, out_features)
    # bf16 MXU operands + reordered EMA summation vs. the f32 sequential loop.
    tol = dict(atol=5e-2, rtol=5e-2)
    assert jnp.allclose(hk, hk_ref, **tol)
    assert jnp.allclose(hiddens, hiddens_ref, **tol)
    assert jnp.allclose(hk2, hk_ref, **tol)
    assert jnp.allclose(hiddens2, hiddens_ref, **tol)

    print("KERNEL_OK")
</pallas_src>

<mosaic_0001>
module attributes {stable_mosaic.version = 11 : i64} {
  func.func @_bf16_matmul_kernel(%arg0: i32, %arg1: memref<2x256xf32, #tpu.memory_space<vmem>>, %arg2: memref<256x128xbf16, #tpu.memory_space<vmem>>, %arg3: memref<2x128xf32, #tpu.memory_space<vmem>>) attributes {dimension_semantics = [#tpu.dimension_semantics<parallel>], iteration_bounds = array<i64: 1>, scalar_prefetch = 0 : i64, scratch_operands = 0 : i64, tpu.core_type = #tpu.core_type<tc>, window_params = [{transform_indices = @transform_0, window_bounds = array<i64: 2, 256>}, {pipeline_mode = #tpu.pipeline_mode<synchronous>, transform_indices = @transform_1, window_bounds = array<i64: 256, 128>}, {transform_indices = @transform_2, window_bounds = array<i64: 2, 128>}]} {
    %c0 = arith.constant 0 : index
    %c0_0 = arith.constant 0 : index
    %0 = vector.load %arg1[%c0, %c0_0] : memref<2x256xf32, #tpu.memory_space<vmem>>, vector<2x256xf32>
    %1 = arith.truncf %0 : vector<2x256xf32> to vector<2x256xbf16>
    %c0_1 = arith.constant 0 : index
    %c0_2 = arith.constant 0 : index
    %2 = vector.load %arg2[%c0_1, %c0_2] : memref<256x128xbf16, #tpu.memory_space<vmem>>, vector<256x128xbf16>
    %cst = arith.constant dense<0.000000e+00> : vector<2x128xf32>
    %3 = tpu.matmul %1, %2, %cst {dimension_numbers = #tpu.dot_dimension_numbers<[1], [0], [0], [1], [0, 0, 1, 1], [], []>} : vector<2x256xbf16>, vector<256x128xbf16>, vector<2x128xf32> -> vector<2x128xf32>
    %c0_3 = arith.constant 0 : index
    %c0_4 = arith.constant 0 : index
    %4 = vector.load %arg3[%c0_3, %c0_4] : memref<2x128xf32, #tpu.memory_space<vmem>>, vector<2x128xf32>
    tpu.vector_store %arg3[%c0_3, %c0_4], %3 {strides = array<i32>} : memref<2x128xf32, #tpu.memory_space<vmem>>, vector<2x128xf32>,
    return
  }
  func.func @transform_0(%arg0: i32) -> (i32, i32) {
    %c0_i32 = arith.constant 0 : i32
    %c0_i32_0 = arith.constant 0 : i32
    return %arg0, %c0_i32 : i32, i32
  }
  func.func @transform_1(%arg0: i32) -> (i32, i32) {
    %c0_i32 = arith.constant 0 : i32
    %c0_i32_0 = arith.constant 0 : i32
    %c0_i32_1 = arith.constant 0 : i32
    return %c0_i32, %c0_i32_0 : i32, i32
  }
  func.func @transform_2(%arg0: i32) -> (i32, i32) {
    %c0_i32 = arith.constant 0 : i32
    %c0_i32_0 = arith.constant 0 : i32
    return %arg0, %c0_i32 : i32, i32
  }
}

</mosaic_0001>

<bundles_post_ra>
// kernel: tpu_custom_call.1
= control target key start
LH: loop header
LB: loop body
LE: loop exit
PB: predicated region body
PF: predicated region fallthrough
CT: control target
= control target key end

     0   :  { %7 = vsyncpa [#allocation3], 0  ;;  %s393_s0 = inlined_call_operand.hbm [shape: f32[2,256], index: 0, kind: input, shape index: {}]   ;;  %s394_s1 = inlined_call_operand.hbm [shape: bf16[256,128], index: 1, kind: input, shape index: {}]   ;;  %s395_s2 = inlined_call_operand.hbm [shape: f32[2,128], index: 2, kind: output, shape index: {}]  }
   0x1   :  { %8 = vsyncpa [#allocation6], 0 }
   0x2   :  { %9 = vsyncpa [#allocation4], 0  ;;  %s364_s9 = smov [#allocation2]   ;;  %s365_s11 = smov [#allocation5]  }
   0x3   :  { %s16_s10 = sshll.u32 %s364_s9, 4  ;;  %s25_s12 = sshll.u32 %s365_s11, 4  ;;  %s17_s10 = int_to_ptr.vmem [resolvable:$true] %s16_s10  ;;  %s26_s12 = int_to_ptr.vmem [resolvable:$true] %s25_s12 }
   0x4   :  { %s306_s13 = scalar_lea.vmem %s17_s10, 64  ;;  %p311_p1 = scmp.lt.s32.totalorder %s17_s10, %s17_s10 }
   0x5   :  { %p307_p0 = scmp.ne.s32.totalorder %s17_s10, %s306_s13  ;;  %p312_p2 = scmp.lt.s32.totalorder %s306_s13, %s306_s13 }
   0x7   :  { %p313_p3 = por %p312_p2, %p311_p1 }
   0x9   :  { %p314_p4 = pnand %p313_p3, %p307_p0 }
   0xb   :  { %317 = shalt.err (!%p314_p4)
}
   0xc   :  { %19 = dma.hbm_to_vmem [thread:$0]  %s393_s0, 64, %s17_s10, [#allocation3]  }
   0xd   :  { %s326_s16 = scalar_lea.vmem %s26_s12, 2048  ;;  %p331_p6 = scmp.lt.s32.totalorder %s26_s12, %s26_s12 }
   0xe   :  { %p327_p5 = scmp.ne.s32.totalorder %s26_s12, %s326_s16  ;;  %p332_p7 = scmp.lt.s32.totalorder %s326_s16, %s326_s16 }
  0x10   :  { %p333_p8 = por %p332_p7, %p331_p6 }
  0x12   :  { %p334_p9 = pnand %p333_p8, %p327_p5 }
  0x14   :  { %337 = shalt.err (!%p334_p9)
}
  0x15   :  { %s366_s17 = smov 64   ;;  %s367_s18 = smov 4  }
  0x16   :  { %31 = dma.hbm_to_vmem [thread:$0]  %s394_s1, 2048, %s26_s12, [#allocation6], %s366_s17, %s366_s17, %s367_s18  }
  0x17   :  { %358 = dma.done.wait [#allocation3], 64  }
  0x18   :  { %359 = vsyncadd [#allocation3], 4294967232 }
  0x19   :  { %360 = dma.done.wait [#allocation6], 2048  }
  0x1a   :  { %361 = vsyncadd [#allocation6], 4294965248  ;;  %v282_v0 = vld [vmem:[#allocation5 + $0x78] sm:$0xff]   ;;  %v284_v2 = vld [vmem:[#allocation5 + $0x70] sm:$0xff]   ;;  %s368_s0 = smov [#allocation7]  }
  0x1b   :  { %v283_v1 = vld [vmem:[#allocation5 + $0x38] sm:$0xff]   ;;  %255 = vmatprep.subr.bf16.mxu0 %v282_v0  ;;  %v285_v3 = vld [vmem:[#allocation5 + $0x30] sm:$0xff]   ;;  %v286_v4 = vld [vmem:[#allocation5 + $0x68] sm:$0xff]   ;;  %s228_s1 = sshll.u32 %s368_s0, 4  ;;  %s229_s1 = int_to_ptr.vmem [resolvable:$true] %s228_s1 }
  0x1c   :  { %256 = vmatpush3.bf16.msra.mxu0 %v283_v1  ;;  %v287_v5 = vld [vmem:[#allocation5 + $0x28] sm:$0xff]   ;;  %v288_v6 = vld [vmem:[#allocation5 + $0x60] sm:$0xff]   ;;  %v290_v8 = vld [vmem:[#allocation5 + $0x58] sm:$0xff]   ;;  %s338_s21 = scalar_lea.vmem %s229_s1, 32  ;;  %p343_p11 = scmp.lt.s32.totalorder %s229_s1, %s229_s1 }
  0x1d   :  { %257 = vmatprep.subr.bf16.mxu0 %v284_v2  ;;  %v289_v7 = vld [vmem:[#allocation5 + $0x20] sm:$0xff]   ;;  %v291_v9 = vld [vmem:[#allocation5 + $0x18] sm:$0xff]   ;;  %v292_v10 = vld [vmem:[#allocation5 + $0x50] sm:$0xff]   ;;  %p339_p10 = scmp.ne.s32.totalorder %s229_s1, %s338_s21  ;;  %p344_p12 = scmp.lt.s32.totalorder %s338_s21, %s338_s21 }
  0x1e   :  { %v238_v11 = vld.sshfl [vmem:[#allocation2] sm:$0x33 pattern:$0x76325410]  ;;  %v293_v13 = vld [vmem:[#allocation5 + $0x10] sm:$0xff]   ;;  %v294_v15 = vld [vmem:[#allocation5 + $0x48] sm:$0xff]  }
  0x1f   :  { %v48_v12 = vcombine.high %v238_v11, %v238_v11  ;;  %v295_v16 = vld [vmem:[#allocation5 + $0x8] sm:$0xff]   ;;  %v296_v17 = vld [vmem:[#allocation5 + $0x40] sm:$0xff]   ;;  %v51_v19 = vpack.c.bf16 %v238_v11, %v238_v11  ;;  %p345_p13 = por %p344_p12, %p343_p11 }
  0x20   :  { %258 = vmatpush3.bf16.msra.mxu0 %v285_v3  ;;  %v297_v18 = vld [vmem:[#allocation5] sm:$0xff]  }
  0x21   :  { %259 = vmatprep.subr.bf16.mxu0 %v286_v4  ;;  %v52_v14 = vpack.c.bf16 %v48_v12, %v48_v12  ;;  %p346_p0 = pnand %p345_p13, %p339_p10 }
  0x23   :  { %213 = vmatprep.mubr.bf16.mxu0 %v52_v14 }
  0x24   :  { %260 = vmatpush3.bf16.msra.mxu0 %v287_v5 }
  0x25   :  { %261 = vmatprep.subr.bf16.mxu0 %v288_v6 }
  0x28   :  { %262 = vmatpush3.bf16.msra.mxu0 %v289_v7 }
  0x29   :  { %263 = vmatprep.subr.bf16.mxu0 %v290_v8 }
  0x2c   :  { %264 = vmatpush3.bf16.msra.mxu0 %v291_v9 }
  0x2d   :  { %265 = vmatprep.subr.bf16.mxu0 %v292_v10 }
  0x30   :  { %266 = vmatpush3.bf16.msra.mxu0 %v293_v13 }
  0x31   :  { %267 = vmatprep.subr.bf16.mxu0 %v294_v15 }
  0x34   :  { %268 = vmatpush3.bf16.msra.mxu0 %v295_v16 }
  0x35   :  { %269 = vmatprep.subr.bf16.mxu0 %v296_v17 }
  0x38   :  { %270 = vmatpush3.bf16.msra.mxu0 %v297_v18 }
  0x3b   :  { %214 = vmatmul.mubr.bf16.vlgmr.msra.gmra.mxu0 %v51_v19 }
  0xfb   :  { %v271_v20 = vpop.f32.mrf.mxu0 }
  0xfd   :  { %v272_v21 = vpop.f32.mrf.mxu0 }
  0xfe   :  { %v273_v22 = vadd.f32 %v272_v21, %v271_v20 }
  0xff   :  { %v274_v23 = vpop.f32.mrf.mxu0 }
 0x100   :  { %221 = vst [vmem:[#allocation7] sm:$0x3] %v273_v22 }
 0x101   :  { %v275_v24 = vpop.f32.mrf.mxu0 }
 0x102   :  { %349 = shalt.err (!%p346_p0)
}
 0x103   :  { %231 = dma.vmem_to_hbm [thread:$0]  %s229_s1, 32, %s395_s2, [#allocation4]  }
 0x104   :  { %362 = dma.done.wait [#allocation4], 32  }
 0x105   :  { %363 = vsyncadd [#allocation4], 4294967264 }
 0x106   :  { %235 = vsyncpa [#allocation3], 1 }
 0x107   :  { %236 = vsyncpa [#allocation6], 1 }
 0x108   :  { %237 = vsyncpa [#allocation4], 1 }

</bundles_post_ra>
